<compile_context>
chip_gen: v7x
topology: tpu7x:2x2x1
jax: 0.10.0
libtpu: 0.0.40
codegen_flags: <defaults>
</compile_context>

<pallas_src>
import jax
import jax.numpy as jnp
from jax.experimental import pallas as pl
from jax.experimental.pallas import tpu as pltpu


def _round_up(x, m):
    return ((x + m - 1) // m) * m


def _proj_kernel(h_ref, s_ref, w_ref, o_ref):
    # hw = (H * out_deg^{-1/2}) @ W  -- tiny matmul, computed once, streamed by rows.
    hs = h_ref[...] * s_ref[...]
    o_ref[...] = jnp.dot(hs, w_ref[...], preferred_element_type=jnp.float32)


def _agg_kernel(adj_ref, hw_ref, scale_ref, b_ref, o_ref, acc_ref):
    k = pl.program_id(1)

    @pl.when(k == 0)
    def _():
        acc_ref[...] = jnp.zeros_like(acc_ref)

    # A tile arrives as bf16 (exact 0/1 values); accumulate in f32.
    adj = adj_ref[...].astype(jnp.float32)
    acc_ref[...] += jnp.dot(adj, hw_ref[...], preferred_element_type=jnp.float32)

    @pl.when(k == pl.num_programs(1) - 1)
    def _():
        z = acc_ref[...] * scale_ref[...] + b_ref[...]
        # LeakyReLU, PyTorch default negative_slope = 0.01
        o_ref[...] = jnp.where(z > 0, z, 0.01 * z).astype(o_ref.dtype)
        # TODO(synk): training-mode dropout (config.dropout) omitted; eval forward is identity.


def gcn_layer(adj, h, weight, bias, *, tile=512):
    """adj: [N, N] raw 0/1 adjacency with adj[dst, src]; h: [N, in_dim]."""
    n, in_dim = h.shape
    out_dim = weight.shape[1]

    adj = adj.astype(jnp.float32)
    # Degrees of the raw graph, clamped to >= 1 (allow_zero_in_degree=True semantics).
    out_deg = jnp.maximum(jnp.sum(adj, axis=0), 1.0)   # per-src column sums
    in_deg = jnp.maximum(jnp.sum(adj, axis=1), 1.0)    # per-dst row sums
    out_scale = (out_deg ** -0.5).astype(jnp.float32)[:, None]   # [N, 1]
    in_scale = (in_deg ** -0.5).astype(jnp.float32)[:, None]     # [N, 1]

    # Tile selection: one block for small graphs; (8,128)-legal square tiles otherwise.
    # 512 bf16 tiles (0.5 MiB/buffer) fit comfortably on v5e/v6e (128 MiB) and v7x (64 MiB)
    # with double-buffering, while staying near the HBM roofline.
    if n <= tile:
        n_pad = _round_up(n, 8)
        tm = tk = n_pad
    else:
        n_pad = _round_up(n, tile)
        tm = tk = tile
    pad_n = n_pad - n

    adj_p = jnp.pad(adj, ((0, pad_n), (0, pad_n))).astype(jnp.bfloat16)  # exact on 0/1
    h_p = jnp.pad(h.astype(jnp.float32), ((0, pad_n), (0, 0)))
    out_scale_p = jnp.pad(out_scale, ((0, pad_n), (0, 0)), constant_values=1.0)
    in_scale_p = jnp.pad(in_scale, ((0, pad_n), (0, 0)), constant_values=1.0)
    bias2d = bias.reshape(1, out_dim).astype(jnp.float32)
    w = weight.astype(jnp.float32)

    # Stage 1: hw = (H * out_deg^{-1/2}) @ W   -> [n_pad, out_dim]
    hw = pl.pallas_call(
        _proj_kernel,
        out_shape=jax.ShapeDtypeStruct((n_pad, out_dim), jnp.float32),
        grid=(n_pad // tm,),
        in_specs=[
            pl.BlockSpec((tm, in_dim), lambda i: (i, 0)),
            pl.BlockSpec((tm, 1), lambda i: (i, 0)),
            pl.BlockSpec((in_dim, out_dim), lambda i: (0, 0)),
        ],
        out_specs=pl.BlockSpec((tm, out_dim), lambda i: (i, 0)),
        compiler_params=pltpu.CompilerParams(dimension_semantics=("parallel",)),
    )(h_p, out_scale_p, w)

    # Stage 2: out = LeakyReLU(in_deg^{-1/2} * (A @ hw) + b), tiled (rows, reduction).
    out = pl.pallas_call(
        _agg_kernel,
        out_shape=jax.ShapeDtypeStruct((n_pad, out_dim), jnp.float32),
        grid=(n_pad // tm, n_pad // tk),
        in_specs=[
            pl.BlockSpec((tm, tk), lambda i, k: (i, k)),        # bf16 adjacency tiles
            pl.BlockSpec((tk, out_dim), lambda i, k: (k, 0)),   # hw K-slice
            pl.BlockSpec((tm, 1), lambda i, k: (i, 0)),         # in_deg^{-1/2} row scale
            pl.BlockSpec((1, out_dim), lambda i, k: (0, 0)),    # bias
        ],
        out_specs=pl.BlockSpec((tm, out_dim), lambda i, k: (i, 0)),
        scratch_shapes=[pltpu.VMEM((tm, out_dim), jnp.float32)],
        compiler_params=pltpu.CompilerParams(
            dimension_semantics=("parallel", "arbitrary")),
    )(adj_p, hw, in_scale_p, bias2d)

    return out[:n]


if __name__ == "__main__":
    key = jax.random.PRNGKey(0)
    k_case1, k_case2 = jax.random.split(key, 2)

    def reference(adj, h, weight, bias):
        out_deg = jnp.maximum(adj.sum(0), 1.0)
        in_deg = jnp.maximum(adj.sum(1), 1.0)
        hw = (h * (out_deg[:, None] ** -0.5)) @ weight
        z = (in_deg[:, None] ** -0.5) * (adj @ hw) + bias[None, :]
        return jnp.where(z > 0, z, 0.01 * z)

    def run_case(n, in_dim, out_dim, tile, case_key):
        ka, kh, kw, kb = jax.random.split(case_key, 4)
        adj = jax.random.bernoulli(ka, p=0.2, shape=(n, n)).astype(jnp.float32)
        h = jax.random.normal(kh, (n, in_dim), dtype=jnp.float32)
        limit = (6.0 / (in_dim + out_dim)) ** 0.5  # Xavier-uniform (DGL default)
        weight = jax.random.uniform(kw, (in_dim, out_dim), minval=-limit, maxval=limit,
                                    dtype=jnp.float32)
        bias = 0.1 * jax.random.normal(kb, (out_dim,), dtype=jnp.float32)

        out = gcn_layer(adj, h, weight, bias, tile=tile)
        jax.block_until_ready(out)

        ref = reference(adj, h, weight, bias)
        assert out.shape == (n, out_dim), out.shape
        assert jnp.allclose(out, ref, atol=1e-4, rtol=1e-4), \
            float(jnp.max(jnp.abs(out - ref)))

    # Small demo shape implied by the module config: in_dim=16 -> out_dim=8.
    run_case(32, 16, 8, 512, k_case1)    # single-block path (grid 1x1)
    run_case(256, 16, 8, 128, k_case2)   # tiled path: 2x2 grid, K-accumulation exercised

    print("KERNEL_OK")
</pallas_src>

<mosaic_0001>
module attributes {stable_mosaic.version = 11 : i64} {
  func.func @_proj_kernel(%arg0: i32, %arg1: memref<32x16xf32, #tpu.memory_space<vmem>>, %arg2: memref<32x1xf32, #tpu.memory_space<vmem>>, %arg3: memref<16x8xf32, #tpu.memory_space<vmem>>, %arg4: memref<32x8xf32, #tpu.memory_space<vmem>>) attributes {dimension_semantics = [#tpu.dimension_semantics<parallel>], iteration_bounds = array<i64: 1>, scalar_prefetch = 0 : i64, scratch_operands = 0 : i64, tpu.core_type = #tpu.core_type<tc>, window_params = [{transform_indices = @transform_0, window_bounds = array<i64: 32, 16>}, {transform_indices = @transform_1, window_bounds = array<i64: 32, 1>}, {pipeline_mode = #tpu.pipeline_mode<synchronous>, transform_indices = @transform_2, window_bounds = array<i64: 16, 8>}, {transform_indices = @transform_3, window_bounds = array<i64: 32, 8>}]} {
    %c0 = arith.constant 0 : index
    %c0_0 = arith.constant 0 : index
    %0 = vector.load %arg1[%c0, %c0_0] : memref<32x16xf32, #tpu.memory_space<vmem>>, vector<32x16xf32>
    %c0_1 = arith.constant 0 : index
    %c0_2 = arith.constant 0 : index
    %1 = vector.load %arg2[%c0_1, %c0_2] : memref<32x1xf32, #tpu.memory_space<vmem>>, vector<32x1xf32>
    %2 = vector.broadcast %1 : vector<32x1xf32> to vector<32x16xf32>
    %3 = arith.mulf %0, %2 : vector<32x16xf32>
    %c0_3 = arith.constant 0 : index
    %c0_4 = arith.constant 0 : index
    %4 = vector.load %arg3[%c0_3, %c0_4] : memref<16x8xf32, #tpu.memory_space<vmem>>, vector<16x8xf32>
    %cst = arith.constant dense<0.000000e+00> : vector<32x8xf32>
    %5 = tpu.matmul %3, %4, %cst {dimension_numbers = #tpu.dot_dimension_numbers<[1], [0], [0], [1], [0, 0, 1, 1], [], []>} : vector<32x16xf32>, vector<16x8xf32>, vector<32x8xf32> -> vector<32x8xf32>
    %c0_5 = arith.constant 0 : index
    %c0_6 = arith.constant 0 : index
    %6 = vector.load %arg4[%c0_5, %c0_6] : memref<32x8xf32, #tpu.memory_space<vmem>>, vector<32x8xf32>
    tpu.vector_store %arg4[%c0_5, %c0_6], %5 {strides = array<i32>} : memref<32x8xf32, #tpu.memory_space<vmem>>, vector<32x8xf32>,
    return
  }
  func.func @transform_0(%arg0: i32) -> (i32, i32) {
    %c0_i32 = arith.constant 0 : i32
    %c0_i32_0 = arith.constant 0 : i32
    return %arg0, %c0_i32 : i32, i32
  }
  func.func @transform_1(%arg0: i32) -> (i32, i32) {
    %c0_i32 = arith.constant 0 : i32
    %c0_i32_0 = arith.constant 0 : i32
    return %arg0, %c0_i32 : i32, i32
  }
  func.func @transform_2(%arg0: i32) -> (i32, i32) {
    %c0_i32 = arith.constant 0 : i32
    %c0_i32_0 = arith.constant 0 : i32
    %c0_i32_1 = arith.constant 0 : i32
    return %c0_i32, %c0_i32_0 : i32, i32
  }
  func.func @transform_3(%arg0: i32) -> (i32, i32) {
    %c0_i32 = arith.constant 0 : i32
    %c0_i32_0 = arith.constant 0 : i32
    return %arg0, %c0_i32 : i32, i32
  }
}

</mosaic_0001>

<bundles_post_ra>
// kernel: tpu_custom_call.1
= control target key start
LH: loop header
LB: loop body
LE: loop exit
PB: predicated region body
PF: predicated region fallthrough
CT: control target
= control target key end

     0   :  { %v184_v0 = vmov 0   ;;  %vm48_vm0 = vcmask 130048   ;;  %vm146_vm1 = vcmask 64512   ;;  %s247_s1 = inlined_call_operand.vmem [shape: f32[32,1], index: 1, kind: input, shape index: {}]   ;;  %s248_s2 = inlined_call_operand.vmem [shape: f32[16,8], index: 2, kind: input, shape index: {}]   ;;  %s249_s0 = inlined_call_operand.vmem [shape: f32[32,16], index: 0, kind: input, shape index: {}]   ;;  %s250_s3 = inlined_call_operand.vmem [shape: f32[32,8], index: 3, kind: output, shape index: {}]  }
   0x1   :  { %183 = vset.pattern.permute.xlu1 %v184_v0  ;;  %182 = vset.pattern.permute.xlu0 %v184_v0  ;;  %v19_v1 = vld [vmem:[%s247_s1 + $0x8] sm:$0xff]  ;;  %v18_v2 = vld [vmem:[%s247_s1] sm:$0xff]  ;;  %v21_v5 = vld [vmem:[%s247_s1 + $0x18] sm:$0xff] }
   0x2   :  { %29 = vperm.xlu1 %183, %v19_v1   ;;  %24 = vperm.xlu0 %182, %v18_v2   ;;  %v46_v3 = vld [vmem:[%s248_s2] sm:$0xff]  ;;  %v47_v4 = vld [vmem:[%s248_s2 + $0x8] sm:$0xff]  ;;  %v20_v6 = vld [vmem:[%s247_s1 + $0x10] sm:$0xff] }
   0x3   :  { %v175_v7 = vpack.c.bf16 %v47_v4, %v46_v3  ;;  %v15_v8 = vld [vmem:[%s249_s0 + $0x8] sm:$0xff]  ;;  %v14_v9 = vld [vmem:[%s249_s0] sm:$0xff]  ;;  %v17_v14 = vld [vmem:[%s249_s0 + $0x18] sm:$0xff] }
   0x4   :  { %v16_v15 = vld [vmem:[%s249_s0 + $0x10] sm:$0xff] }
   0x5   :  { %176 = vmatprep.subr.bf16.mxu0 %v175_v7  ;;  %179 = vmatprep.subr.bf16.mxu1 %v175_v7 }
   0x6   :  { %39 = vperm.xlu1 %183, %v21_v5   ;;  %34 = vperm.xlu0 %182, %v20_v6  }
   0x7   :  { %178 = vmatpush3.bf16.msra.mxu0 %v175_v7  ;;  %180 = vmatpush3.bf16.msra.mxu1 %v175_v7 }
  0x81   :  { %v30_v10 = vpop.permute.xlu1 %29  ;;  %v25_v11 = vpop.permute.xlu0 %24 }
  0x82   :  { %v43_v12 = vmul.f32 %v30_v10, %v15_v8  ;;  %v42_v13 = vmul.f32 %v25_v11, %v14_v9 }
  0x84   :  { %169 = vmatprep.mubr.msk.f32.mxu0 %vm48_vm0, %v42_v13 }
  0x85   :  { %v40_v16 = vpop.permute.xlu1 %39  ;;  %v35_v17 = vpop.permute.xlu0 %34  ;;  %170 = vmatmul.mubr.msk.f32.vlgmr.msra.gmra.mrb[0].mxu0 %vm48_vm0, %v43_v12 }
  0x86   :  { %v45_v18 = vmul.f32 %v40_v16, %v17_v14  ;;  %v44_v19 = vmul.f32 %v35_v17, %v16_v15 }
  0x88   :  { %172 = vmatprep.mubr.msk.f32.mxu1 %vm48_vm0, %v44_v19 }
  0x89   :  { %173 = vmatmul.mubr.msk.f32.vlgmr.msra.gmra.mrb[0].mxu1 %vm48_vm0, %v45_v18 }
 0x158   :  { %v171_v20 = vpop.f32.mrb[0].mxu0 }
 0x159   :  { %148 = vst.msk [vmem:[%s250_s3 + $0x8] sm:$0xff] %vm146_vm1, %v171_v20  ;;  %v127_v21 = vpop.f32.mrb[1].mxu0 }
 0x15a   :  { %147 = vst.msk [vmem:[%s250_s3] sm:$0xff] %vm146_vm1, %v127_v21 }
 0x15c   :  { %v174_v22 = vpop.f32.mrb[0].mxu1 }
 0x15d   :  { %150 = vst.msk [vmem:[%s250_s3 + $0x18] sm:$0xff] %vm146_vm1, %v174_v22  ;;  %v137_v23 = vpop.f32.mrb[1].mxu1 }
 0x15e   :  { %149 = vst.msk [vmem:[%s250_s3 + $0x10] sm:$0xff] %vm146_vm1, %v137_v23 }

</bundles_post_ra>
